<compile_context>
chip_gen: v5e
topology: v5e:2x2
jax: 0.10.0
libtpu: 0.0.40
codegen_flags: <defaults>
</compile_context>

<pallas_src>
import jax
import jax.numpy as jnp
import numpy as np
from jax.experimental import pallas as pl
from jax.experimental.pallas import tpu as pltpu


def _round_up(x, m):
    return ((x + m - 1) // m) * m


def _make_kernel(apply_act):
    """refs = (x, w_folded, shift_folded, out)."""

    def kernel(x_ref, w_ref, t_ref, o_ref):
        # (C_out, C_in) @ (C_in, tile_hw) on the MXU, f32 accumulation.
        h = jnp.dot(w_ref[...], x_ref[...], preferred_element_type=jnp.float32)
        h = h + t_ref[...]                      # (C_out, 1) sublane broadcast
        if apply_act:
            h = jnp.maximum(h, 0.0)
        o_ref[...] = h.astype(o_ref.dtype)

    return kernel


def conv2d_bn_relu(x, weight, bias, gamma, beta, running_mean, running_var, *,
                   eps=1e-5, stride=(1, 1), if_bn=True, activation=True,
                   tile_hw=1024, mxu_dtype=jnp.bfloat16, out_dtype=None):
    """Fused forward of seedformer `Conv2d` (1x1 conv -> BN (eval) -> ReLU).

    x:      (N, C_in, H, W) NCHW (PyTorch layout)
    weight: (C_out, C_in, 1, 1) PyTorch conv weight
    bias:   (C_out,)
    gamma/beta/running_mean/running_var: (C_out,) BatchNorm2d parameters.
    mxu_dtype: dtype for x/W on the MXU (bf16 default; None => keep f32).
    out_dtype: output dtype (None => same as input x).
    """
    N, C_in, H, W = x.shape
    C_out = weight.shape[0]
    assert weight.shape[2:] == (1, 1), "only kernel_size=(1,1) supported"

    sh, sw = stride
    if (sh, sw) != (1, 1):
        x = x[:, :, ::sh, ::sw]          # exact for a 1x1 kernel, VALID padding
    H_out, W_out = x.shape[2], x.shape[3]
    HW = H_out * W_out

    out_dtype = out_dtype if out_dtype is not None else x.dtype

    # Free, layout-preserving reshape: NCHW -> (N, C_in, H*W); H*W on lanes.
    x3 = x.reshape(N, C_in, HW)

    # Fold eval-mode BN + conv bias into the weights (matches PyTorch op order
    # (x@W + b)*scale + shift within f32 rounding):  W' = W*scale, t' = b*scale+shift.
    w2 = weight.reshape(C_out, C_in).astype(jnp.float32)
    b1 = bias.astype(jnp.float32)
    if if_bn:
        scale = gamma.astype(jnp.float32) * jax.lax.rsqrt(
            running_var.astype(jnp.float32) + eps)
        shift = beta.astype(jnp.float32) - running_mean.astype(jnp.float32) * scale
        w2 = w2 * scale[:, None]
        t1 = b1 * scale + shift
    else:
        t1 = b1
    t2 = t1.reshape(C_out, 1)

    if mxu_dtype is not None:            # bf16 default: 2x MXU, half the traffic
        x3 = x3.astype(mxu_dtype)
        w2 = w2.astype(mxu_dtype)

    # Lane tile: big (up to 1024), multiple of 128, no padded copies (grid cdiv
    # masks the tail block).  Guarantee >=2 grid steps for v7x megacore when the
    # batch is 1 and HW allows it.
    tile_hw = max(128, min(_round_up(tile_hw, 128), _round_up(HW, 128)))
    if N == 1:
        while tile_hw > 128 and (HW + tile_hw - 1) // tile_hw < 2:
            tile_hw = max(128, _round_up(tile_hw // 2, 128))
    n_hw = pl.cdiv(HW, tile_hw)
    grid = (N, n_hw)

    # Weight / shift blocks never change across the grid -> single buffer.
    const_mode = pl.Buffered(1)
    in_specs = [
        pl.BlockSpec((None, C_in, tile_hw), lambda n, j: (n, 0, j)),
        pl.BlockSpec((C_out, C_in), lambda n, j: (0, 0), pipeline_mode=const_mode),
        pl.BlockSpec((C_out, 1), lambda n, j: (0, 0), pipeline_mode=const_mode),
    ]
    out_specs = pl.BlockSpec((None, C_out, tile_hw), lambda n, j: (n, 0, j))

    x_item = int(np.dtype(x3.dtype).itemsize)
    w_item = int(np.dtype(w2.dtype).itemsize)
    o_item = int(np.dtype(out_dtype).itemsize)

    # Explicit VMEM budget from the actual tile footprint (double-buffered x/out,
    # single-buffered params) so larger tiles don't trip v5e's 16 MiB scoped
    # default, clamped to v7x's 64 MiB physical VMEM.
    vmem_need = (2 * C_in * tile_hw * x_item
                 + C_out * C_in * w_item
                 + C_out * 4
                 + 2 * C_out * tile_hw * o_item)
    vmem_limit = int(min(max(2 * vmem_need, 32 << 20), 64 << 20))

    flops = 2 * N * HW * C_in * C_out + N * HW * C_out
    bytes_accessed = (N * C_in * HW * x_item        # x
                      + C_out * C_in * w_item       # folded W
                      + C_out * 4                   # folded shift
                      + N * C_out * HW * o_item)    # output

    out = pl.pallas_call(
        _make_kernel(activation),
        out_shape=jax.ShapeDtypeStruct((N, C_out, HW), out_dtype),
        grid=grid,
        in_specs=in_specs,
        out_specs=out_specs,
        compiler_params=pltpu.CompilerParams(
            dimension_semantics=("parallel", "parallel"),
            vmem_limit_bytes=vmem_limit),
        cost_estimate=pl.CostEstimate(
            flops=flops, transcendentals=0, bytes_accessed=bytes_accessed),
    )(x3, w2, t2)

    return out.reshape(N, C_out, H_out, W_out)       # free reshape, already NCHW


def conv2d_bn_relu_reference(x, weight, bias, gamma, beta, running_mean,
                             running_var, *, eps=1e-5, stride=(1, 1),
                             if_bn=True, activation=True):
    """Plain-JAX reference matching the PyTorch module (eval-mode BN)."""
    out = jax.lax.conv_general_dilated(
        x, weight, window_strides=stride, padding="VALID",
        dimension_numbers=("NCHW", "OIHW", "NCHW"),
        precision=jax.lax.Precision.HIGHEST)
    out = out + bias.reshape(1, -1, 1, 1)
    if if_bn:
        inv = jax.lax.rsqrt(running_var.reshape(1, -1, 1, 1) + eps)
        out = (out - running_mean.reshape(1, -1, 1, 1)) * inv
        out = out * gamma.reshape(1, -1, 1, 1) + beta.reshape(1, -1, 1, 1)
    if activation:
        out = jnp.maximum(out, 0.0)
    return out


if __name__ == "__main__":
    key = jax.random.PRNGKey(0)
    N, C_in, H, W = 2, 4, 16, 16
    C_out = 32

    keys = jax.random.split(key, 7)
    x = jax.random.normal(keys[0], (N, C_in, H, W), jnp.float32)
    bound = 1.0 / np.sqrt(C_in)          # nn.Conv2d default init range
    weight = jax.random.uniform(keys[1], (C_out, C_in, 1, 1), jnp.float32,
                                -bound, bound)
    bias = jax.random.uniform(keys[2], (C_out,), jnp.float32, -bound, bound)
    gamma = jax.random.uniform(keys[3], (C_out,), jnp.float32, 0.5, 1.5)
    beta = 0.1 * jax.random.normal(keys[4], (C_out,), jnp.float32)
    running_mean = 0.1 * jax.random.normal(keys[5], (C_out,), jnp.float32)
    running_var = jax.random.uniform(keys[6], (C_out,), jnp.float32, 0.5, 1.5)

    ref = jax.block_until_ready(
        conv2d_bn_relu_reference(x, weight, bias, gamma, beta, running_mean,
                                 running_var, eps=1e-5, stride=(1, 1),
                                 if_bn=True, activation=True))

    # Exact-numerics path (f32 on the MXU): tight tolerance vs. the reference.
    out_f32 = jax.block_until_ready(
        conv2d_bn_relu(x, weight, bias, gamma, beta, running_mean, running_var,
                       eps=1e-5, stride=(1, 1), if_bn=True, activation=True,
                       mxu_dtype=None))
    assert out_f32.shape == (N, C_out, H, W)
    np.testing.assert_allclose(np.asarray(out_f32), np.asarray(ref),
                               rtol=1e-4, atol=1e-4)

    # Default fast path (bf16 x/W on the MXU, f32 accumulation): looser tolerance.
    out_bf16 = jax.block_until_ready(
        conv2d_bn_relu(x, weight, bias, gamma, beta, running_mean, running_var,
                       eps=1e-5, stride=(1, 1), if_bn=True, activation=True))
    assert out_bf16.shape == (N, C_out, H, W)
    np.testing.assert_allclose(np.asarray(out_bf16), np.asarray(ref),
                               rtol=5e-2, atol=5e-2)

    print("KERNEL_OK")
</pallas_src>

<mosaic_0001>
module attributes {stable_mosaic.version = 11 : i64} {
  func.func @kernel(%arg0: i32, %arg1: i32, %arg2: memref<1x4x256xf32, #tpu.memory_space<vmem>>, %arg3: memref<32x4xf32, #tpu.memory_space<vmem>>, %arg4: memref<32x1xf32, #tpu.memory_space<vmem>>, %arg5: memref<1x32x256xf32, #tpu.memory_space<vmem>>) attributes {dimension_semantics = [#tpu.dimension_semantics<parallel>, #tpu.dimension_semantics<parallel>], iteration_bounds = array<i64: 2, 1>, scalar_prefetch = 0 : i64, scratch_operands = 0 : i64, tpu.core_type = #tpu.core_type<tc>, window_params = [{transform_indices = @transform_0, window_bounds = array<i64: 1, 4, 256>}, {pipeline_mode = #tpu.pipeline_mode<synchronous>, transform_indices = @transform_1, window_bounds = array<i64: 32, 4>}, {pipeline_mode = #tpu.pipeline_mode<synchronous>, transform_indices = @transform_2, window_bounds = array<i64: 32, 1>}, {transform_indices = @transform_3, window_bounds = array<i64: 1, 32, 256>}]} {
    %c0 = arith.constant 0 : index
    %c0_0 = arith.constant 0 : index
    %0 = vector.load %arg3[%c0, %c0_0] : memref<32x4xf32, #tpu.memory_space<vmem>>, vector<32x4xf32>
    %c0_1 = arith.constant 0 : index
    %c0_2 = arith.constant 0 : index
    %c0_3 = arith.constant 0 : index
    %1 = vector.load %arg2[%c0_1, %c0_2, %c0_3] : memref<1x4x256xf32, #tpu.memory_space<vmem>>, vector<1x4x256xf32>
    %2 = vector.shape_cast %1 : vector<1x4x256xf32> to vector<4x256xf32>
    %cst = arith.constant dense<0.000000e+00> : vector<32x256xf32>
    %3 = tpu.matmul %0, %2, %cst {dimension_numbers = #tpu.dot_dimension_numbers<[1], [0], [0], [1], [0, 0, 1, 1], [], []>} : vector<32x4xf32>, vector<4x256xf32>, vector<32x256xf32> -> vector<32x256xf32>
    %c0_4 = arith.constant 0 : index
    %c0_5 = arith.constant 0 : index
    %4 = vector.load %arg4[%c0_4, %c0_5] : memref<32x1xf32, #tpu.memory_space<vmem>>, vector<32x1xf32>
    %5 = vector.broadcast %4 : vector<32x1xf32> to vector<32x256xf32>
    %6 = arith.addf %3, %5 : vector<32x256xf32>
    %cst_6 = arith.constant 0.000000e+00 : f32
    %7 = vector.broadcast %cst_6 : f32 to vector<32x256xf32>
    %8 = arith.maximumf %6, %7 : vector<32x256xf32>
    %c0_7 = arith.constant 0 : index
    %c0_8 = arith.constant 0 : index
    %c0_9 = arith.constant 0 : index
    %9 = vector.load %arg5[%c0_7, %c0_8, %c0_9] : memref<1x32x256xf32, #tpu.memory_space<vmem>>, vector<1x32x256xf32>
    %10 = vector.shape_cast %9 : vector<1x32x256xf32> to vector<32x256xf32>
    %11 = vector.shape_cast %8 : vector<32x256xf32> to vector<1x32x256xf32>
    tpu.vector_store %arg5[%c0_7, %c0_8, %c0_9], %11 {strides = array<i32>} : memref<1x32x256xf32, #tpu.memory_space<vmem>>, vector<1x32x256xf32>,
    return
  }
  func.func @transform_0(%arg0: i32, %arg1: i32) -> (i32, i32, i32) {
    %c0_i32 = arith.constant 0 : i32
    %c0_i32_0 = arith.constant 0 : i32
    return %arg0, %c0_i32, %arg1 : i32, i32, i32
  }
  func.func @transform_1(%arg0: i32, %arg1: i32) -> (i32, i32) {
    %c0_i32 = arith.constant 0 : i32
    %c0_i32_0 = arith.constant 0 : i32
    %c0_i32_1 = arith.constant 0 : i32
    return %c0_i32, %c0_i32_0 : i32, i32
  }
  func.func @transform_2(%arg0: i32, %arg1: i32) -> (i32, i32) {
    %c0_i32 = arith.constant 0 : i32
    %c0_i32_0 = arith.constant 0 : i32
    %c0_i32_1 = arith.constant 0 : i32
    return %c0_i32, %c0_i32_0 : i32, i32
  }
  func.func @transform_3(%arg0: i32, %arg1: i32) -> (i32, i32, i32) {
    %c0_i32 = arith.constant 0 : i32
    %c0_i32_0 = arith.constant 0 : i32
    return %arg0, %c0_i32, %arg1 : i32, i32, i32
  }
}

</mosaic_0001>

<bundles_post_ra>
// kernel: tpu_custom_call.1
= control target key start
LH: loop header
LB: loop body
LE: loop exit
PB: predicated region body
PF: predicated region fallthrough
CT: control target
= control target key end

     0   :  { %8 = vsyncpa [#allocation3], 0  ;;  %s756_s0 = inlined_call_operand.vmem [shape: f32[2,4,256], index: 0, kind: input, shape index: {}]   ;;  %s757_s1 = inlined_call_operand.vmem [shape: f32[32,4], index: 1, kind: input, shape index: {}]   ;;  %s758_s2 = inlined_call_operand.vmem [shape: f32[32,1], index: 2, kind: input, shape index: {}]   ;;  %s759_s3 = inlined_call_operand.hbm [shape: f32[2,32,256], index: 3, kind: output, shape index: {}]  }
   0x1   :  { %10 = vsyncpa [#allocation3 + $0x1], 0  ;;  %s612_s12 = smov 0   ;;  %s614_s13 = smov 0  }
   0x2   :  { %s616_s14 = smov 0   ;;  %s618_s15 = smov 0  }
   0x3   :  { %s620_s16 = smov 0   ;;  %s622_s17 = smov 0  }
   0x4 LB: > { %s422_s18 = sadd.s32 4294967295, %s587_s17   ;;  %s423_s19 = sadd.s32 4294967294, %s587_s17   ;;  %s587_s17 = sphi %s622_s17, %s16_s17   ;;  %s583_s16 = sphi %s620_s16, %s766_s16   ;;  %s579_s15 = sphi %s618_s15, %s765_s15   ;;  %s575_s14 = sphi %s616_s14, %s764_s14   ;;  %s571_s13 = sphi %s614_s13, %s763_s13   ;;  %s567_s12 = sphi %s612_s12, %s762_s12  }
   0x5   : > { %s28_s20 = sadd.s32 1, %s583_s16  ;;  %s107_s21 = sadd.s32 1, %s575_s14 }
   0x6   : > { %p30_p0 = scmp.ge.s32.totalorder %s28_s20, 2  ;;  %p117_p1 = scmp.ne.s32.totalorder %s575_s14, %s571_s13 }
   0x7   : > { %p118_p2 = scmp.eq.s32.totalorder %s422_s18, 1  ;;  %p123_p3 = scmp.ne.s32.totalorder %s571_s13, %s567_s12 }
   0x8   : > { %s768_s20 = smov (%p30_p0, %s28_s20), 0  ;;  %p124_p5 = scmp.eq.s32.totalorder %s423_s19, 1 }
   0x9   : > { %p652_p4 = por %p118_p2, %p117_p1  ;;  %s102_s23 = ssub.s32 %s583_s16, %s768_s20 }
   0xa   : > { %p426_p6 = scmp.ge.s32.totalorder %s587_s17, 1  ;;  %p105_p7 = scmp.eq.s32.totalorder %s102_s23, 0 }
   0xb   : > { %p659_p8 = por %p124_p5, %p123_p3  ;;  %p161_p9 = scmp.lt.s32.totalorder %s587_s17, 3 }
   0xc   : > { %s665_s25 = scalar_select %p105_p7, %s575_s14, %s107_s21  }
   0xd   : > { %p162_p10 = pnand %p426_p6, %p161_p9 }
   0xe   : > { %p190_p11 = scmp.lt.s32.totalorder (!%p162_p10), %s579_s15, 1  ;;  %s186_s30 = sand.u32 (!%p162_p10), 1, %s571_s13  }
   0xf   : > { %165 = sbr.rel (%p162_p10) target bundleno = 184 (0xb8), region = 32  ;;  %s446_s6 = sshll.u32 (!%p162_p10), %s579_s15, 6 }
  0x10   : > { %s339_s9 = scalar_lea.hbm (!%p162_p10), %s759_s3, %s446_s6  ;;  %s326_s11 = scalar_lea.sflag (!%p162_p10), [#allocation3], %s186_s30 }
  0x11   : > { %s342_s10 = sshll.u32 (!%p162_p10), %s339_s9, 4  ;;  %s529_s26 = scalar_lea.hbm (!%p162_p10), %s759_s3, 128  ;;  %s343_s10 = int_to_ptr.hbm [resolvable:$true] %s342_s10 }
  0x12   : > { %s523_s18 = sshra.s32 (!%p162_p10), %s343_s10, 4  ;;  %s524_s18 = int_to_ptr.hbm [resolvable:$true] %s523_s18 }
  0x13   : > { %s525_s19 = scalar_lea.hbm (!%p162_p10), %s524_s18, 64  ;;  %p530_p1 = scmp.lt.s32.totalorder (!%p162_p10), %s524_s18, %s759_s3 }
  0x14   : > { %v589_v0 = vmov 0   ;;  %v207_v1 = vld [vmem:[%s758_s2 + $0x10] sm:$0xff]  ;;  %s191_s28 = scalar_select %p190_p11, %s579_s15, 1  ;;  %v205_v2 = vld [vmem:[%s758_s2] sm:$0xff]  ;;  %v208_v4 = vld [vmem:[%s758_s2 + $0x18] sm:$0xff]  ;;  %vm246_vm0 = vcmask 1043456  }
  0x15   : > { %508 = vset.pattern.permute.xlu1 %v589_v0  ;;  %507 = vset.pattern.permute.xlu0 %v589_v0  ;;  %v206_v5 = vld [vmem:[%s758_s2 + $0x8] sm:$0xff]  ;;  %v200_v6 = vld [vmem:[%s757_s1] sm:$0xff]  ;;  %vm233_vm1 = vcmask 31744   ;;  %v202_v7 = vld [vmem:[%s757_s1 + $0x10] sm:$0xff]  ;;  %p526_p12 = scmp.ne.s32.totalorder %s524_s18, %s525_s19  ;;  %p531_p2 = scmp.lt.s32.totalorder %s529_s26, %s525_s19 }
  0x16   : > { %221 = vperm.xlu1 %508, %v207_v1   ;;  %211 = vperm.xlu0 %507, %v205_v2   ;;  %s445_s4 = sshll.u32 %s191_s28, 3  ;;  %v201_v10 = vld [vmem:[%s757_s1 + $0x8] sm:$0xff]  ;;  %v203_v11 = vld [vmem:[%s757_s1 + $0x18] sm:$0xff] }
  0x17   : > { %s197_s7 = scalar_lea.vmem %s756_s0, %s445_s4  ;;  %s427_s4 = sshll.u32 %s186_s30, 6 }
  0x18   : > { %v204_v3 = vld [vmem:[%s197_s7] sm:$0xff]  ;;  %s707_s5 = scalar_lea.vmem [#allocation2], %s427_s4  ;;  %p527_p13 = pnand %p526_p12, %p652_p4 }
  0x19   : > { %230 = vst [vmem:[#allocation1] ss:$2 sm:$0xff] %v204_v3  ;;  %s340_s15 = sshll.u32 %s707_s5, 4  ;;  %p532_p3 = por %p531_p2, %p530_p1  ;;  %s341_s15 = int_to_ptr.vmem [resolvable:$true] %s340_s15 }
  0x1a   : > { %p528_p0 = pneg %p527_p13 }
  0x1c   : > { %p533_p5 = pnand %p532_p3, %p528_p0 }
  0x1e   : > { %226 = vperm.xlu1 %508, %v208_v4   ;;  %216 = vperm.xlu0 %507, %v206_v5  }
  0x20   : > { %v231_v8 = vld.sshfl [vmem:[#allocation1] sm:$0xff pattern:$0x75316420]  ;;  %v232_v9 = vld.sshfl [vmem:[#allocation1 + $0x8] sm:$0xff pattern:$0x75316420] }
  0x21   : > { %430 = vmatpush.msk.msra.mxu0 %vm246_vm0, %v231_v8  ;;  %447 = vmatpush.msk.msra.mxu2 %vm246_vm0, %v231_v8 }
  0x22   : > { %435 = vmatpush.msk.msra.mxu1 %vm246_vm0, %v232_v9  ;;  %448 = vmatpush.msk.msra.mxu3 %vm246_vm0, %v232_v9 }
  0x23   : > { %431 = vmatmul.msk.f32.vlgmr.msra.gmra.mxu0 %vm233_vm1, %v200_v6  ;;  %433 = vmatmul.msk.f32.vlgmr.msra.gmra.mxu2 %vm233_vm1, %v202_v7 }
  0x24   : > { %436 = vmatmul.msk.f32.vlgmr.msra.gmra.mxu1 %vm233_vm1, %v200_v6  ;;  %438 = vmatmul.msk.f32.vlgmr.msra.gmra.mxu3 %vm233_vm1, %v202_v7 }
  0x2b   : > { %432 = vmatmul.msk.f32.gmra.mxu0 %vm233_vm1, %v201_v10  ;;  %434 = vmatmul.msk.f32.gmra.mxu2 %vm233_vm1, %v203_v11 }
  0x2c   : > { %437 = vmatmul.msk.f32.gmra.mxu1 %vm233_vm1, %v201_v10  ;;  %439 = vmatmul.msk.f32.gmra.mxu3 %vm233_vm1, %v203_v11 }
  0x88   : > { %v212_v12 = vpop.permute.xlu0 %211  ;;  %v222_v18 = vpop.permute.xlu1 %221 }
  0x90   : > { %v217_v23 = vpop.permute.xlu0 %216  ;;  %v227_v33 = vpop.permute.xlu1 %226 }
  0xa0   : > { %v268_v13 = vpop.f32.mrf.mxu0 }
  0xa1   : > { %v269_v14 = vadd.f32 %v268_v13, %v212_v12  ;;  %v297_v15 = vpop.f32.mrf.mxu1 }
  0xa2   : > { %v298_v16 = vadd.f32 %v297_v15, %v212_v12 }
  0xa3   : > { %v309_v17 = vmax.f32 %v269_v14, 0.0 }
  0xa4   : > { %v310_v19 = vmax.f32 %v298_v16, 0.0 }
  0xa5   : > { %317 = vst [vmem:[%s707_s5] sm:$0xff] %v309_v17 }
  0xa6   : > { %318 = vst [vmem:[%s707_s5 + $0x8] sm:$0xff] %v310_v19  ;;  %v274_v20 = vpop.f32.mrf.mxu2 }
  0xa7   : > { %v275_v21 = vadd.f32 %v274_v20, %v222_v18  ;;  %v303_v22 = vpop.f32.mrf.mxu3 }
  0xa8   : > { %v304_v24 = vadd.f32 %v303_v22, %v222_v18  ;;  %v271_v25 = vpop.f32.mrf.mxu0 }
  0xa9   : > { %v313_v26 = vmax.f32 %v275_v21, 0.0  ;;  %v272_v27 = vadd.f32 %v271_v25, %v217_v23  ;;  %v300_v28 = vpop.f32.mrf.mxu1 }
  0xaa   : > { %v314_v29 = vmax.f32 %v304_v24, 0.0  ;;  %v301_v30 = vadd.f32 %v300_v28, %v217_v23 }
  0xab   : > { %321 = vst [vmem:[%s707_s5 + $0x20] sm:$0xff] %v313_v26  ;;  %v311_v31 = vmax.f32 %v272_v27, 0.0 }
  0xac   : > { %322 = vst [vmem:[%s707_s5 + $0x28] sm:$0xff] %v314_v29  ;;  %v312_v32 = vmax.f32 %v301_v30, 0.0 }
  0xad   : > { %319 = vst [vmem:[%s707_s5 + $0x10] sm:$0xff] %v311_v31 }
  0xae   : > { %320 = vst [vmem:[%s707_s5 + $0x18] sm:$0xff] %v312_v32  ;;  %v277_v34 = vpop.f32.mrf.mxu2 }
  0xaf   : > { %v278_v35 = vadd.f32 %v277_v34, %v227_v33  ;;  %v306_v36 = vpop.f32.mrf.mxu3 }
  0xb0   : > { %v307_v37 = vadd.f32 %v306_v36, %v227_v33 }
  0xb1   : > { %v315_v38 = vmax.f32 %v278_v35, 0.0 }
  0xb2   : > { %v316_v39 = vmax.f32 %v307_v37, 0.0 }
  0xb3   : > { %323 = vst [vmem:[%s707_s5 + $0x30] sm:$0xff] %v315_v38 }
  0xb4   : > { %324 = vst [vmem:[%s707_s5 + $0x38] sm:$0xff] %v316_v39 }
  0xb5   : > { %536 = shalt.err (!%p533_p5)
}
  0xb6   : > { %s590_s29 = smov 256   ;;  %s591_s30 = smov 16  }
  0xb7   : > { %449 = dma.vmem_to_hbm [thread:$0]  (%p652_p4), %s341_s15, 1024, %s343_s10, %s326_s11, %s590_s29, %s590_s29, %s591_s30  }
  0xb8 PF: > { %p455_p6 = scmp.ge.s32.totalorder %s587_s17, 2  ;;  %s357_s4 = sand.u32 1, %s567_s12  }
  0xb9   : > { %s358_s5 = scalar_lea.sflag [#allocation3], %s357_s4 }
  0xba   : > { %p452_p7 = pnand %p455_p6, %p659_p8 }
  0xbc   : > { %p453_p9 = pneg %p452_p7 }
  0xbe   : > { %562 = dma.done.wait (%p453_p9), %s358_s5, 1024  }
  0xbf   : > { %564 = vsyncadd (%p453_p9), %s358_s5, 4294966272  ;;  %s16_s17 = sadd.s32 1, %s587_s17   ;;  %s762_s12 = smov %s571_s13 }
  0xc0   : > { %p13_p10 = scmp.ge.s32.totalorder %s16_s17, 4   ;;  %s763_s13 = smov %s575_s14 }
  0xc1   : > { %s764_s14 = smov %s665_s25  ;;  %s765_s15 = smov %s583_s16 }
  0xc2   : > { %s766_s16 = smov %s768_s20  ;;  %15 = sbr.rel (!%p13_p10) target bundleno = 4 (0x4), region = 67 }
  0xc7   :  { %364 = vsyncpa [#allocation3], 1 }
  0xc8   :  { %366 = vsyncpa [#allocation3 + $0x1], 1 }

</bundles_post_ra>
